<compile_context>
chip_gen: v7x
topology: tpu7x:2x2x1
jax: 0.10.0
libtpu: 0.0.40
codegen_flags: <defaults>
</compile_context>

<pallas_src>
import jax
import jax.numpy as jnp
from jax.experimental import pallas as pl
from jax.experimental.pallas import tpu as pltpu


_NEG_BIG = -1e30  # finite "minus infinity" for padded logits (exp underflows to 0 in f32)


def _round_up(a: int, b: int) -> int:
    return pl.cdiv(a, b) * b


def _vmem_capacity_bytes() -> int:
    # Capability query only; falls back to the smallest per-TC VMEM (v7x: 64 MiB).
    try:
        return int(pltpu.get_tpu_info().vmem_capacity_bytes)
    except Exception:
        return 64 * 1024 * 1024


def _choose_tm(n_rows: int, in_dim: int, out_cols: int, requested: int) -> int:
    # Budget the double-buffered f32 x tile + f32 out tile to ~8 MiB of scoped VMEM.
    per_row_bytes = 2 * 4 * (in_dim + out_cols)
    budget_rows = max(128, (8 * 1024 * 1024) // per_row_bytes)
    tm = min(requested, budget_rows)
    # Keep >= 2 grid steps so both v7x TensorCores get work (harmless on v5e/v6e).
    tm = min(tm, max(16, pl.cdiv(n_rows, 2)))
    # bf16 sublane packing / MXU-friendly M: multiple of 128 when possible, else 16.
    if tm >= 128:
        tm = (tm // 128) * 128
    else:
        tm = _round_up(tm, 16)
    return max(16, tm)


def mlp_linear_kernel(x_ref, w_ref, b_ref, o_ref):
    # x_ref: (tm, in_dim) f32 ; w_ref: (in_dim, out_cols) bf16 ; b_ref: (1, out_cols) f32
    # In-kernel bf16 cast of x (VPU, free in a memory-bound kernel); MXU matmul in the
    # native (M,K)@(K,N) layout with f32 accumulation; bias add + stable log_softmax in f32.
    x_bf16 = x_ref[...].astype(jnp.bfloat16)
    logits = jnp.dot(x_bf16, w_ref[...], preferred_element_type=jnp.float32) + b_ref[...]
    m = jnp.max(logits, axis=-1, keepdims=True)                       # row max (XLU)
    shifted = logits - m
    lse = jnp.log(jnp.sum(jnp.exp(shifted), axis=-1, keepdims=True))  # EUP exp/log, XLU sum
    o_ref[...] = (shifted - lse).astype(o_ref.dtype)


def _build_call(n_rows, in_dim, out_cols, tm, out_dtype, vmem_limit_bytes):
    grid = (pl.cdiv(n_rows, tm),)
    in_specs = [
        pl.BlockSpec((tm, in_dim), lambda i: (i, 0)),        # x row tile
        pl.BlockSpec((in_dim, out_cols), lambda i: (0, 0)),  # W resident (grid-invariant)
        pl.BlockSpec((1, out_cols), lambda i: (0, 0)),       # bias resident
    ]
    out_spec = pl.BlockSpec((tm, out_cols), lambda i: (i, 0))

    cp_kwargs = dict(dimension_semantics=("parallel",))
    if vmem_limit_bytes is not None:
        cp_kwargs["vmem_limit_bytes"] = vmem_limit_bytes

    return pl.pallas_call(
        mlp_linear_kernel,
        out_shape=jax.ShapeDtypeStruct((n_rows, out_cols), out_dtype),
        grid_spec=pltpu.PrefetchScalarGridSpec(
            num_scalar_prefetch=0,
            grid=grid,
            in_specs=in_specs,
            out_specs=out_spec,
        ),
        compiler_params=pltpu.CompilerParams(**cp_kwargs),
    )


def mlp_linear_forward(x, weight, bias, *, tm=1024, out_dtype=jnp.float32):
    """log_softmax(x @ weight.T + bias, axis=-1), fused in one Pallas kernel.

    x:      [N, in_dim]        float32 (cast to bf16 *inside* the kernel for the MXU;
                                f32 accumulation, bias add, and log_softmax)
    weight: [out_dim, in_dim]  PyTorch nn.Linear layout (transposed once here to [K, N])
    bias:   [out_dim]
    returns [N, out_dim] log-probabilities (float32 by default)
    """
    N, in_dim = x.shape
    out_dim, in_dim_w = weight.shape
    assert in_dim_w == in_dim, "weight must be [out_dim, in_dim] (nn.Linear layout)"

    # One-time weight transform: [out_dim, in_dim] -> MXU-native [in_dim, out_cols] bf16.
    # Lane-pad out only when out_dim >= 128 and not already a multiple of 128; small class
    # counts stay unpadded (output block last dim == full array dim is legal and avoids
    # writing 8x extra HBM bytes at e.g. out_dim=16).
    lane_pad = (out_dim >= 128) and (out_dim % 128 != 0)
    out_cols = _round_up(out_dim, 128) if lane_pad else out_dim

    w_kn = weight.T.astype(jnp.bfloat16)                    # [in_dim, out_dim]
    b_row = bias.astype(jnp.float32)[None, :]                # [1, out_dim]
    if lane_pad:
        w_kn = jnp.pad(w_kn, ((0, 0), (0, out_cols - out_dim)))                       # zero cols
        b_row = jnp.pad(b_row, ((0, 0), (0, out_cols - out_dim)), constant_values=_NEG_BIG)

    tm = _choose_tm(N, in_dim, out_cols, tm)

    # VMEM estimate: double-buffered x (f32) + out (f32) tiles, plus W/bias counted at 2x
    # (default pipelining double-buffers even grid-invariant inputs).
    vmem_est = (2 * tm * in_dim * 4
                + 2 * tm * out_cols * 4
                + 2 * (in_dim * out_cols * 2 + out_cols * 4))
    vmem_limit = None
    if vmem_est > 16 * 1024 * 1024:  # smallest default scoped VMEM (v5e)
        cap = _vmem_capacity_bytes()
        vmem_limit = min(int(vmem_est * 1.25) + (4 << 20), max(cap - (8 << 20), 16 << 20))
        # TODO(synk): if the resident W alone cannot fit VMEM (very large out_dim*in_dim),
        # add a second grid axis over out_cols with a two-pass / online log-softmax.

    out = _build_call(N, in_dim, out_cols, tm, out_dtype, vmem_limit)(x, w_kn, b_row)
    return out[:, :out_dim] if lane_pad else out


if __name__ == "__main__":
    # Small deterministic problem: 512 "nodes", in_dim=32 features, out_dim=16 classes.
    N, in_dim, out_dim = 512, 32, 16
    key = jax.random.PRNGKey(0)
    kx, kw, kb = jax.random.split(key, 3)

    x = jax.random.normal(kx, (N, in_dim), dtype=jnp.float32)
    # Deterministic init mimicking nn.Linear.reset_parameters (uniform bounds).
    bound = 1.0 / (in_dim ** 0.5)
    weight = jax.random.uniform(kw, (out_dim, in_dim), jnp.float32, -bound, bound)
    bias = jax.random.uniform(kb, (out_dim,), jnp.float32, -bound, bound)

    out = mlp_linear_forward(x, weight, bias)
    out = jax.block_until_ready(out)
    assert out.shape == (N, out_dim)
    assert bool(jnp.all(jnp.isfinite(out)))

    # Reference 1: bf16-consistent matmul (same precision as the kernel) — tight check.
    xb = x.astype(jnp.bfloat16).astype(jnp.float32)
    wb = weight.astype(jnp.bfloat16).astype(jnp.float32)
    ref_bf16 = jax.nn.log_softmax(xb @ wb.T + bias, axis=-1)
    assert jnp.allclose(out, ref_bf16, atol=2e-4, rtol=2e-4)

    # Reference 2: full-f32 module semantics — loose check (bf16 matmul operands).
    ref_f32 = jax.nn.log_softmax(x @ weight.T + bias, axis=-1)
    assert jnp.allclose(out, ref_f32, atol=5e-2, rtol=5e-2)

    print("KERNEL_OK")
</pallas_src>

<mosaic_0001>
module attributes {stable_mosaic.version = 11 : i64} {
  func.func @mlp_linear_kernel(%arg0: i32, %arg1: memref<256x32xf32, #tpu.memory_space<vmem>>, %arg2: memref<32x16xbf16, #tpu.memory_space<vmem>>, %arg3: memref<1x16xf32, #tpu.memory_space<vmem>>, %arg4: memref<256x16xf32, #tpu.memory_space<vmem>>) attributes {dimension_semantics = [#tpu.dimension_semantics<parallel>], iteration_bounds = array<i64: 2>, scalar_prefetch = 0 : i64, scratch_operands = 0 : i64, tpu.core_type = #tpu.core_type<tc>, window_params = [{transform_indices = @transform_0, window_bounds = array<i64: 256, 32>}, {pipeline_mode = #tpu.pipeline_mode<synchronous>, transform_indices = @transform_1, window_bounds = array<i64: 32, 16>}, {pipeline_mode = #tpu.pipeline_mode<synchronous>, transform_indices = @transform_2, window_bounds = array<i64: 1, 16>}, {transform_indices = @transform_3, window_bounds = array<i64: 256, 16>}]} {
    %c0 = arith.constant 0 : index
    %c0_0 = arith.constant 0 : index
    %0 = vector.load %arg1[%c0, %c0_0] : memref<256x32xf32, #tpu.memory_space<vmem>>, vector<256x32xf32>
    %1 = arith.truncf %0 : vector<256x32xf32> to vector<256x32xbf16>
    %c0_1 = arith.constant 0 : index
    %c0_2 = arith.constant 0 : index
    %2 = vector.load %arg2[%c0_1, %c0_2] : memref<32x16xbf16, #tpu.memory_space<vmem>>, vector<32x16xbf16>
    %cst = arith.constant dense<0.000000e+00> : vector<256x16xf32>
    %3 = tpu.matmul %1, %2, %cst {dimension_numbers = #tpu.dot_dimension_numbers<[1], [0], [0], [1], [0, 0, 1, 1], [], []>} : vector<256x32xbf16>, vector<32x16xbf16>, vector<256x16xf32> -> vector<256x16xf32>
    %c0_3 = arith.constant 0 : index
    %c0_4 = arith.constant 0 : index
    %4 = vector.load %arg3[%c0_3, %c0_4] : memref<1x16xf32, #tpu.memory_space<vmem>>, vector<1x16xf32>
    %5 = vector.broadcast %4 : vector<1x16xf32> to vector<256x16xf32>
    %6 = arith.addf %3, %5 : vector<256x16xf32>
    %cst_5 = arith.constant dense<0xFF800000> : vector<256xf32>
    %7 = vector.multi_reduction <maximumf>, %6, %cst_5 [1] : vector<256x16xf32> to vector<256xf32>
    %8 = vector.shape_cast %7 : vector<256xf32> to vector<256x1xf32>
    %9 = vector.broadcast %8 : vector<256x1xf32> to vector<256x16xf32>
    %10 = arith.subf %6, %9 : vector<256x16xf32>
    %11 = math.exp %10 : vector<256x16xf32>
    %cst_6 = arith.constant dense<0.000000e+00> : vector<256xf32>
    %12 = vector.multi_reduction <add>, %11, %cst_6 [1] : vector<256x16xf32> to vector<256xf32>
    %13 = vector.shape_cast %12 : vector<256xf32> to vector<256x1xf32>
    %14 = math.log %13 : vector<256x1xf32>
    %15 = vector.broadcast %14 : vector<256x1xf32> to vector<256x16xf32>
    %16 = arith.subf %10, %15 : vector<256x16xf32>
    %c0_7 = arith.constant 0 : index
    %c0_8 = arith.constant 0 : index
    %17 = vector.load %arg4[%c0_7, %c0_8] : memref<256x16xf32, #tpu.memory_space<vmem>>, vector<256x16xf32>
    tpu.vector_store %arg4[%c0_7, %c0_8], %16 {strides = array<i32>} : memref<256x16xf32, #tpu.memory_space<vmem>>, vector<256x16xf32>,
    return
  }
  func.func @transform_0(%arg0: i32) -> (i32, i32) {
    %c0_i32 = arith.constant 0 : i32
    %c0_i32_0 = arith.constant 0 : i32
    return %arg0, %c0_i32 : i32, i32
  }
  func.func @transform_1(%arg0: i32) -> (i32, i32) {
    %c0_i32 = arith.constant 0 : i32
    %c0_i32_0 = arith.constant 0 : i32
    %c0_i32_1 = arith.constant 0 : i32
    return %c0_i32, %c0_i32_0 : i32, i32
  }
  func.func @transform_2(%arg0: i32) -> (i32, i32) {
    %c0_i32 = arith.constant 0 : i32
    %c0_i32_0 = arith.constant 0 : i32
    %c0_i32_1 = arith.constant 0 : i32
    return %c0_i32, %c0_i32_0 : i32, i32
  }
  func.func @transform_3(%arg0: i32) -> (i32, i32) {
    %c0_i32 = arith.constant 0 : i32
    %c0_i32_0 = arith.constant 0 : i32
    return %arg0, %c0_i32 : i32, i32
  }
}

</mosaic_0001>

<bundles_post_ra>
// kernel: tpu_custom_call.1
= control target key start
LH: loop header
LB: loop body
LE: loop exit
PB: predicated region body
PF: predicated region fallthrough
CT: control target
= control target key end

     0   :  { %s1183_s12 = smov 0   ;;  %s1686_s0 = inlined_call_operand.vmem [shape: f32[512,32], index: 0, kind: input, shape index: {}]   ;;  %s1687_s1 = inlined_call_operand.vmem [shape: bf16[32,16], index: 1, kind: input, shape index: {}]   ;;  %s1688_s2 = inlined_call_operand.vmem [shape: f32[1,16], index: 2, kind: input, shape index: {}]   ;;  %s1689_s3 = inlined_call_operand.vmem [shape: f32[512,16], index: 3, kind: output, shape index: {}]  }
   0x1 LB: > { %s929_s13 = sadd.s32 4294967295, %s1161_s12   ;;  %p933_p0 = scmp.ge.s32.totalorder %s1161_s12, 1  ;;  %s1161_s12 = sphi %s1183_s12, %s13_s12  }
   0x2   : > { %p138_p1 = scmp.lt.s32.totalorder %s1161_s12, 3 }
   0x4   : > { %p139_p2 = pnand %p933_p0, %p138_p1 }
   0x5   : > { %v1025_v0 = vld [vmem:[%s1687_s1] sm:$0xff] (!%p139_p2)   ;;  %s934_s16 = sshll.u32 (!%p139_p2), %s929_s13, 5  ;;  %v1026_v1 = vld [vmem:[%s1687_s1 + $0x8] sm:$0xff] (!%p139_p2)   ;;  %vm246_vm0 = vcmask (!%p139_p2), 261120   ;;  %vm456_vm1 = vcmask (!%p139_p2), 130048  }
   0x6   : > { %142 = sbr.rel (%p139_p2) target bundleno = 616 (0x268), region = 32  ;;  %p163_p3 = scmp.lt.s32.totalorder (!%p139_p2), %s934_s16, 63  ;;  %977 = vmatprep.subr.bf16.mxu0 (!%p139_p2), %v1025_v0  ;;  %1013 = vmatprep.subr.bf16.mxu1 (!%p139_p2), %v1025_v0  ;;  %v1258_v50 = vld [vmem:[%s1688_s2] ss:$0 sm:$0xff] (!%p139_p2) }
   0x7   : > { %978 = vmatpush3.bf16.msra.mxu0 (!%p139_p2), %v1025_v0  ;;  %1015 = vmatpush3.bf16.msra.mxu1 (!%p139_p2), %v1025_v0 }
   0x8   : > { %979 = vmatprep.subr.bf16.mxu0 (!%p139_p2), %v1026_v1  ;;  %1014 = vmatprep.subr.bf16.mxu1 (!%p139_p2), %v1026_v1 }
   0xb   : > { %980 = vmatpush3.bf16.msra.mxu0 (!%p139_p2), %v1026_v1  ;;  %1016 = vmatpush3.bf16.msra.mxu1 (!%p139_p2), %v1026_v1 }
   0xd   : > { %s1691_s16 = smov (!%p163_p3, %s934_s16), 63 }
   0xe   : > { %s935_s19 = sshll.u32 %s1691_s16, 3 }
   0xf   : > { %s1205_s22 = scalar_lea.vmem %s1686_s0, %s935_s19  ;;  %s1585_s27 = scalar_lea.vmem %s1689_s3, %s935_s19 }
  0x10   : > { %v175_v2 = vld [vmem:[%s1205_s22] sm:$0xff]  ;;  %v176_v3 = vld [vmem:[%s1205_s22 + $0x8] sm:$0xff]  ;;  %v177_v7 = vld [vmem:[%s1205_s22 + $0x10] sm:$0xff] }
  0x11   : > { %v191_v4 = vld [vmem:[%s1205_s22 + $0x80] sm:$0xff]  ;;  %v207_v5 = vpack.c.bf16 %v176_v3, %v175_v2  ;;  %v192_v6 = vld [vmem:[%s1205_s22 + $0x88] sm:$0xff]  ;;  %v178_v8 = vld [vmem:[%s1205_s22 + $0x18] sm:$0xff] }
  0x12   : > { %v215_v9 = vpack.c.bf16 %v192_v6, %v191_v4  ;;  %v208_v10 = vpack.c.bf16 %v178_v8, %v177_v7  ;;  %v193_v11 = vld [vmem:[%s1205_s22 + $0x90] sm:$0xff]  ;;  %v194_v12 = vld [vmem:[%s1205_s22 + $0x98] sm:$0xff]  ;;  %v179_v13 = vld [vmem:[%s1205_s22 + $0x20] sm:$0xff] }
  0x13   : > { %981 = vmatprep.mubr.msk.bf16.mxu0 %vm246_vm0, %v207_v5  ;;  %v216_v14 = vpack.c.bf16 %v194_v12, %v193_v11  ;;  %v180_v15 = vld [vmem:[%s1205_s22 + $0x28] sm:$0xff]  ;;  %v195_v17 = vld [vmem:[%s1205_s22 + $0xa0] sm:$0xff]  ;;  %v181_v19 = vld [vmem:[%s1205_s22 + $0x30] sm:$0xff] }
  0x14   : > { %997 = vmatprep.mubr.msk.bf16.mxu1 %vm246_vm0, %v215_v9  ;;  %982 = vmatmul.mubr.msk.bf16.vlgmr.msra.gmra.mrb[0].mxu0 %vm246_vm0, %v208_v10  ;;  %v209_v16 = vpack.c.bf16 %v180_v15, %v179_v13  ;;  %v196_v18 = vld [vmem:[%s1205_s22 + $0xa8] sm:$0xff]  ;;  %v182_v20 = vld [vmem:[%s1205_s22 + $0x38] sm:$0xff]  ;;  %v197_v22 = vld [vmem:[%s1205_s22 + $0xb0] sm:$0xff] }
  0x15   : > { %998 = vmatmul.mubr.msk.bf16.vlgmr.msra.gmra.mrb[0].mxu1 %vm246_vm0, %v216_v14  ;;  %v217_v21 = vpack.c.bf16 %v196_v18, %v195_v17  ;;  %v198_v23 = vld [vmem:[%s1205_s22 + $0xb8] sm:$0xff]  ;;  %v183_v24 = vld [vmem:[%s1205_s22 + $0x40] sm:$0xff]  ;;  %v184_v25 = vld [vmem:[%s1205_s22 + $0x48] sm:$0xff]  ;;  %v210_v28 = vpack.c.bf16 %v182_v20, %v181_v19 }
  0x16   : > { %985 = vmatprep.mubr.msk.bf16.mxu0 %vm246_vm0, %v209_v16  ;;  %v199_v26 = vld [vmem:[%s1205_s22 + $0xc0] sm:$0xff]  ;;  %v200_v27 = vld [vmem:[%s1205_s22 + $0xc8] sm:$0xff]  ;;  %v218_v29 = vpack.c.bf16 %v198_v23, %v197_v22  ;;  %v211_v30 = vpack.c.bf16 %v184_v25, %v183_v24  ;;  %v185_v32 = vld [vmem:[%s1205_s22 + $0x50] sm:$0xff] }
  0x17   : > { %1001 = vmatprep.mubr.msk.bf16.mxu1 %vm246_vm0, %v217_v21  ;;  %v219_v31 = vpack.c.bf16 %v200_v27, %v199_v26  ;;  %v186_v33 = vld [vmem:[%s1205_s22 + $0x58] sm:$0xff]  ;;  %v201_v34 = vld [vmem:[%s1205_s22 + $0xd0] sm:$0xff]  ;;  %v187_v36 = vld [vmem:[%s1205_s22 + $0x60] sm:$0xff] }
  0x18   : > { %v202_v35 = vld [vmem:[%s1205_s22 + $0xd8] sm:$0xff]  ;;  %v188_v37 = vld [vmem:[%s1205_s22 + $0x68] sm:$0xff]  ;;  %v203_v38 = vld [vmem:[%s1205_s22 + $0xe0] sm:$0xff]  ;;  %v212_v40 = vpack.c.bf16 %v186_v33, %v185_v32 }
  0x19   : > { %v204_v39 = vld [vmem:[%s1205_s22 + $0xe8] sm:$0xff]  ;;  %v220_v41 = vpack.c.bf16 %v202_v35, %v201_v34  ;;  %v213_v42 = vpack.c.bf16 %v188_v37, %v187_v36  ;;  %v189_v44 = vld [vmem:[%s1205_s22 + $0x70] sm:$0xff]  ;;  %v190_v45 = vld [vmem:[%s1205_s22 + $0x78] sm:$0xff] }
  0x1a   : > { %v221_v43 = vpack.c.bf16 %v204_v39, %v203_v38  ;;  %v205_v46 = vld [vmem:[%s1205_s22 + $0xf0] sm:$0xff]  ;;  %v206_v47 = vld [vmem:[%s1205_s22 + $0xf8] sm:$0xff]  ;;  %v214_v48 = vpack.c.bf16 %v190_v45, %v189_v44 }
  0x1b   : > { %v222_v49 = vpack.c.bf16 %v206_v47, %v205_v46 }
  0x1c   : > { %986 = vmatmul.mubr.msk.bf16.gmra.mrb[4].mxu0 %vm246_vm0, %v210_v28 }
  0x1d   : > { %1002 = vmatmul.mubr.msk.bf16.gmra.mrb[4].mxu1 %vm246_vm0, %v218_v29  ;;  %989 = vmatprep.mubr.msk.bf16.mxu0 %vm246_vm0, %v211_v30 }
  0x1e   : > { %1005 = vmatprep.mubr.msk.bf16.mxu1 %vm246_vm0, %v219_v31 }
  0x24   : > { %990 = vmatmul.mubr.msk.bf16.gmra.mrb[8].mxu0 %vm246_vm0, %v212_v40 }
  0x25   : > { %1006 = vmatmul.mubr.msk.bf16.gmra.mrb[8].mxu1 %vm246_vm0, %v220_v41  ;;  %993 = vmatprep.mubr.msk.bf16.mxu0 %vm246_vm0, %v213_v42 }
  0x26   : > { %1009 = vmatprep.mubr.msk.bf16.mxu1 %vm246_vm0, %v221_v43 }
  0x2c   : > { %994 = vmatmul.mubr.msk.bf16.gmra.mrb[12].mxu0 %vm246_vm0, %v214_v48 }
  0x2d   : > { %1010 = vmatmul.mubr.msk.bf16.gmra.mrb[12].mxu1 %vm246_vm0, %v222_v49 }
  0xe7   : > { %v983_v51 = vpop.f32.mrb[0].mxu0 }
  0xe8   : > { %v1261_v52 = vadd.f32 %v983_v51, %v1258_v50  ;;  %v999_v53 = vpop.f32.mrb[0].mxu1  ;;  %v329_v54 = vpop.f32.mrb[1].mxu0 }
  0xe9   : > { %v1264_v55 = vadd.f32 %v999_v53, %v1258_v50  ;;  %v393_v56 = vpop.f32.mrb[1].mxu1  ;;  %v984_v57 = vpop.f32.mrb[2].mxu0  ;;  %v1272_v62 = vadd.f32 %v1258_v50, %v329_v54 }
  0xea   : > { %v1267_v58 = vadd.f32 %v984_v57, %v1258_v50  ;;  %v1000_v59 = vpop.f32.mrb[2].mxu1  ;;  %v332_v60 = vpop.f32.mrb[3].mxu0  ;;  %v463_v61 = vsel %vm456_vm1, %v1261_v52, -inf  ;;  %v1282_v3 = vadd.f32 %v1258_v50, %v393_v56 }
  0xeb   : > { %v396_v63 = vpop.f32.mrb[3].mxu1  ;;  %v511_v0 = vsel %vm456_vm1, %v1264_v55, -inf  ;;  %464 = vmax.xlane.f32.xlu1 %v463_v61  ;;  %v1277_v1 = vadd.f32 %v1000_v59, %v1258_v50  ;;  %v457_v4 = vsel %vm456_vm1, %v1272_v62, -inf  ;;  %v1292_v14 = vadd.f32 %v1258_v50, %v332_v60 }
  0xec   : > { %512 = vmax.xlane.f32.xlu0 %v511_v0  ;;  %v466_v2 = vsel %vm456_vm1, %v1267_v58, -inf  ;;  %v1287_v10 = vadd.f32 %v1258_v50, %v396_v63  ;;  %v505_v15 = vsel %vm456_vm1, %v1282_v3, -inf }
  0xed   : > { %v514_v11 = vsel %vm456_vm1, %v1277_v1, -inf  ;;  %v460_v20 = vsel %vm456_vm1, %v1292_v14, -inf }
  0xee   : > { %v508_v19 = vsel %vm456_vm1, %v1287_v10, -inf }
  0xef   : > { %467 = vmax.xlane.f32.xlu1 %v466_v2  ;;  %v987_v5 = vpop.f32.mrb[4].mxu0 }
  0xf0   : > { %458 = vmax.xlane.f32.xlu0 %v457_v4  ;;  %v345_v6 = vpop.f32.mrb[5].mxu0  ;;  %v1003_v7 = vpop.f32.mrb[4].mxu1  ;;  %v1300_v18 = vadd.f32 %v987_v5, %v1258_v50 }
  0xf1   : > { %v988_v8 = vpop.f32.mrb[6].mxu0  ;;  %v409_v9 = vpop.f32.mrb[5].mxu1  ;;  %v1312_v26 = vadd.f32 %v1003_v7, %v1258_v50  ;;  %v1324_v36 = vadd.f32 %v1258_v50, %v345_v6 }
  0xf2   : > { %v348_v12 = vpop.f32.mrb[7].mxu0  ;;  %v1004_v13 = vpop.f32.mrb[6].mxu1  ;;  %v1297_v17 = vadd.f32 %v988_v8, %v1258_v50  ;;  %v475_v27 = vsel %vm456_vm1, %v1300_v18, -inf  ;;  %v1332_v46 = vadd.f32 %v1258_v50, %v409_v9 }
  0xf3   : > { %515 = vmax.xlane.f32.xlu1 %v514_v11  ;;  %v412_v16 = vpop.f32.mrb[7].mxu1  ;;  %v1307_v22 = vadd.f32 %v1004_v13, %v1258_v50  ;;  %v523_v34 = vsel %vm456_vm1, %v1312_v26, -inf  ;;  %v1321_v35 = vadd.f32 %v1258_v50, %v348_v12  ;;  %v469_v47 = vsel %vm456_vm1, %v1324_v36, -inf }
  0xf4   : > { %506 = vmax.xlane.f32.xlu0 %v505_v15  ;;  %v478_v23 = vsel %vm456_vm1, %v1297_v17, -inf  ;;  %v1327_v42 = vadd.f32 %v1258_v50, %v412_v16  ;;  %v517_v54 = vsel %vm456_vm1, %v1332_v46, -inf }
  0xf5   : > { %v526_v33 = vsel %vm456_vm1, %v1307_v22, -inf  ;;  %v472_v43 = vsel %vm456_vm1, %v1321_v35, -inf }
  0xf6   : > { %v520_v53 = vsel %vm456_vm1, %v1327_v42, -inf }
  0xf7   : > { %509 = vmax.xlane.f32.xlu1 %v508_v19  ;;  %v991_v21 = vpop.f32.mrb[8].mxu0 }
  0xf8   : > { %461 = vmax.xlane.f32.xlu0 %v460_v20  ;;  %v361_v24 = vpop.f32.mrb[9].mxu0  ;;  %v1007_v25 = vpop.f32.mrb[8].mxu1  ;;  %v1340_v51 = vadd.f32 %v991_v21, %v1258_v50 }
  0xf9   : > { %v992_v28 = vpop.f32.mrb[10].mxu0  ;;  %v425_v29 = vpop.f32.mrb[9].mxu1  ;;  %v1352_v59 = vadd.f32 %v1007_v25, %v1258_v50  ;;  %v1364_v2 = vadd.f32 %v1258_v50, %v361_v24 }
  0xfa   : > { %v364_v30 = vpop.f32.mrb[11].mxu0  ;;  %v1008_v31 = vpop.f32.mrb[10].mxu1  ;;  %v1337_v49 = vadd.f32 %v992_v28, %v1258_v50  ;;  %v487_v60 = vsel %vm456_vm1, %v1340_v51, -inf  ;;  %v1372_v6 = vadd.f32 %v1258_v50, %v425_v29 }
  0xfb   : > { %479 = vmax.xlane.f32.xlu1 %v478_v23  ;;  %v428_v32 = vpop.f32.mrb[11].mxu1  ;;  %v1347_v56 = vadd.f32 %v1008_v31, %v1258_v50  ;;  %v535_v63 = vsel %vm456_vm1, %v1352_v59, -inf  ;;  %v1361_v0 = vadd.f32 %v1258_v50, %v364_v30  ;;  %v481_v7 = vsel %vm456_vm1, %v1364_v2, -inf }
  0xfc   : > { %476 = vmax.xlane.f32.xlu0 %v475_v27  ;;  %v490_v57 = vsel %vm456_vm1, %v1337_v49, -inf  ;;  %v1367_v4 = vadd.f32 %v1258_v50, %v428_v32  ;;  %v529_v12 = vsel %vm456_vm1, %v1372_v6, -inf }
  0xfd   : > { %v538_v61 = vsel %vm456_vm1, %v1347_v56, -inf  ;;  %v484_v5 = vsel %vm456_vm1, %v1361_v0, -inf }
  0xfe   : > { %v532_v11 = vsel %vm456_vm1, %v1367_v4, -inf }
  0xff   : > { %527 = vmax.xlane.f32.xlu1 %v526_v33  ;;  %v995_v37 = vpop.f32.mrb[12].mxu0 }
 0x100   : > { %524 = vmax.xlane.f32.xlu0 %v523_v34  ;;  %v377_v38 = vpop.f32.mrb[13].mxu0  ;;  %v1011_v39 = vpop.f32.mrb[12].mxu1  ;;  %v1380_v9 = vadd.f32 %v995_v37, %v1258_v50 }
 0x101   : > { %v996_v40 = vpop.f32.mrb[14].mxu0  ;;  %v441_v41 = vpop.f32.mrb[13].mxu1  ;;  %v1394_v19 = vadd.f32 %v1258_v50, %v377_v38  ;;  %v1414_v29 = vadd.f32 %v1011_v39, %v1258_v50 }
 0x102   : > { %v380_v44 = vpop.f32.mrb[15].mxu0  ;;  %v1012_v45 = vpop.f32.mrb[14].mxu1  ;;  %v1377_v8 = vadd.f32 %v996_v40, %v1258_v50  ;;  %v499_v15 = vsel %vm456_vm1, %v1380_v9, -inf  ;;  %v1400_v21 = vadd.f32 %v1258_v50, %v441_v41 }
 0x103   : > { %473 = vmax.xlane.f32.xlu1 %v472_v43  ;;  %v444_v48 = vpop.f32.mrb[15].mxu1  ;;  %v1391_v16 = vadd.f32 %v1258_v50, %v380_v44  ;;  %v493_v24 = vsel %vm456_vm1, %v1394_v19, -inf  ;;  %v1411_v28 = vadd.f32 %v1012_v45, %v1258_v50  ;;  %v547_v31 = vsel %vm456_vm1, %v1414_v29, -inf }
 0x104   : > { %470 = vmax.xlane.f32.xlu0 %v469_v47  ;;  %v502_v13 = vsel %vm456_vm1, %v1377_v8, -inf  ;;  %v1397_v20 = vadd.f32 %v1258_v50, %v444_v48  ;;  %v541_v27 = vsel %vm456_vm1, %v1400_v21, -inf }
 0x105   : > { %v496_v23 = vsel %vm456_vm1, %v1391_v16, -inf  ;;  %v550_v30 = vsel %vm456_vm1, %v1411_v28, -inf }
 0x106   : > { %v544_v25 = vsel %vm456_vm1, %v1397_v20, -inf }
 0x107   : > { %521 = vmax.xlane.f32.xlu1 %v520_v53 }
 0x108   : > { %518 = vmax.xlane.f32.xlu0 %v517_v54 }
 0x10b   : > { %491 = vmax.xlane.f32.xlu1 %v490_v57 }
 0x10c   : > { %488 = vmax.xlane.f32.xlu0 %v487_v60 }
 0x10f   : > { %539 = vmax.xlane.f32.xlu1 %v538_v61 }
 0x110   : > { %536 = vmax.xlane.f32.xlu0 %v535_v63 }
 0x113   : > { %485 = vmax.xlane.f32.xlu1 %v484_v5 }
 0x114   : > { %482 = vmax.xlane.f32.xlu0 %v481_v7 }
 0x117   : > { %533 = vmax.xlane.f32.xlu1 %v532_v11 }
 0x118   : > { %530 = vmax.xlane.f32.xlu0 %v529_v12 }
 0x11b   : > { %503 = vmax.xlane.f32.xlu1 %v502_v13 }
 0x11c   : > { %500 = vmax.xlane.f32.xlu0 %v499_v15 }
 0x11f   : > { %497 = vmax.xlane.f32.xlu1 %v496_v23 }
 0x120   : > { %494 = vmax.xlane.f32.xlu0 %v493_v24 }
 0x123   : > { %545 = vmax.xlane.f32.xlu1 %v544_v25 }
 0x124   : > { %542 = vmax.xlane.f32.xlu0 %v541_v27 }
 0x127   : > { %551 = vmax.xlane.f32.xlu1 %v550_v30 }
 0x128   : > { %548 = vmax.xlane.f32.xlu0 %v547_v31 }
 0x178   : > { %v465_v32 = vpop.xlane.xlu1 %464 }
 0x179   : > { %v513_v33 = vpop.xlane.xlu0 %512  ;;  %v1421_v34 = vsub.f32 %v1261_v52, %v465_v32 }
 0x17a   : > { %v1424_v37 = vsub.f32 %v1264_v55, %v513_v33 }
 0x17b   : > { %v589_v50 = vmul.f32 1.442695, %v1421_v34 }
 0x17c   : > { %v621_v38 = vmul.f32 1.442695, %v1424_v37  ;;  %v468_v39 = vpop.xlane.xlu1 %467 }
 0x17d   : > { %1027 = vpow2.f32 %v589_v50  ;;  %v1429_v40 = vsub.f32 %v1267_v58, %v468_v39  ;;  %v459_v41 = vpop.xlane.xlu0 %458 }
 0x17e   : > { %v1432_v43 = vsub.f32 %v1272_v62, %v459_v41  ;;  %1029 = vpow2.f32 %v621_v38 }
 0x17f   : > { %v591_v52 = vmul.f32 1.442695, %v1429_v40 }
 0x180   : > { %v585_v44 = vmul.f32 1.442695, %v1432_v43  ;;  %v516_v55 = vpop.xlane.xlu1 %515 }
 0x181   : > { %1031 = vpow2.f32 %v591_v52  ;;  %v1437_v45 = vsub.f32 %v1277_v1, %v516_v55  ;;  %v507_v47 = vpop.xlane.xlu0 %506 }
 0x182   : > { %v1440_v48 = vsub.f32 %v1282_v3, %v507_v47  ;;  %1033 = vpow2.f32 %v585_v44 }
 0x183   : > { %v623_v58 = vmul.f32 1.442695, %v1437_v45 }
 0x184   : > { %v617_v62 = vmul.f32 1.442695, %v1440_v48  ;;  %v510_v53 = vpop.xlane.xlu1 %509 }
 0x185   : > { %1035 = vpow2.f32 %v623_v58  ;;  %v1445_v54 = vsub.f32 %v1287_v10, %v510_v53  ;;  %v462_v57 = vpop.xlane.xlu0 %461 }
 0x186   : > { %v1448_v60 = vsub.f32 %v1292_v14, %v462_v57  ;;  %1037 = vpow2.f32 %v617_v62 }
 0x187   : > { %v1028_v1 = vpop.eup %1027  ;;  %v619_v61 = vmul.f32 1.442695, %v1445_v54 }
 0x188   : > { %v587_v3 = vmul.f32 1.442695, %v1448_v60  ;;  %v480_v63 = vpop.xlane.xlu1 %479  ;;  %v655_v5 = vsel %vm456_vm1, %v1028_v1, 0.0  ;;  %v1030_v7 = vpop.eup %1029 }
 0x189   : > { %v1454_v11 = vsub.f32 %v1297_v17, %v480_v63  ;;  %v477_v12 = vpop.xlane.xlu0 %476  ;;  %656 = vadd.xlane.f32.xlu0 %v655_v5  ;;  %v703_v25 = vsel %vm456_vm1, %v1030_v7, 0.0 }
 0x18a   : > { %1039 = vpow2.f32 %v587_v3  ;;  %v1457_v10 = vsub.f32 %v1300_v18, %v477_v12 }
 0x18b   : > { %v1032_v14 = vpop.eup %1031  ;;  %v599_v13 = vmul.f32 1.442695, %v1454_v11  ;;  %1041 = vpow2.f32 %v619_v61 }
 0x18c   : > { %v597_v15 = vmul.f32 1.442695, %v1457_v10  ;;  %v528_v23 = vpop.xlane.xlu1 %527  ;;  %v658_v24 = vsel %vm456_vm1, %v1032_v14, 0.0  ;;  %v1034_v27 = vpop.eup %1033 }
 0x18d   : > { %v1464_v17 = vsub.f32 %v1307_v22, %v528_v23  ;;  %v525_v30 = vpop.xlane.xlu0 %524  ;;  %659 = vadd.xlane.f32.xlu1 %v658_v24  ;;  %704 = vadd.xlane.f32.xlu0 %v703_v25  ;;  %v649_v39 = vsel %vm456_vm1, %v1034_v27, 0.0 }
 0x18e   : > { %1043 = vpow2.f32 %v597_v15  ;;  %v1467_v18 = vsub.f32 %v1312_v26, %v525_v30 }
 0x18f   : > { %v1036_v31 = vpop.eup %1035  ;;  %1045 = vpow2.f32 %v599_v13  ;;  %v631_v32 = vmul.f32 1.442695, %v1464_v17 }
 0x190   : > { %v629_v33 = vmul.f32 1.442695, %v1467_v18  ;;  %v474_v50 = vpop.xlane.xlu1 %473  ;;  %v706_v38 = vsel %vm456_vm1, %v1036_v31, 0.0  ;;  %v1038_v22 = vpop.eup %1037 }
 0x191   : > { %v1474_v41 = vsub.f32 %v1321_v35, %v474_v50  ;;  %v471_v52 = vpop.xlane.xlu0 %470  ;;  %707 = vadd.xlane.f32.xlu1 %v706_v38  ;;  %650 = vadd.xlane.f32.xlu0 %v649_v39  ;;  %v697_v62 = vsel %vm456_vm1, %v1038_v22, 0.0 }
 0x192   : > { %1047 = vpow2.f32 %v629_v33  ;;  %v1477_v26 = vsub.f32 %v1324_v36, %v471_v52 }
 0x193   : > { %1049 = vpow2.f32 %v631_v32  ;;  %v595_v55 = vmul.f32 1.442695, %v1474_v41 }
 0x194   : > { %v1040_v44 = vpop.eup %1039  ;;  %v593_v47 = vmul.f32 1.442695, %v1477_v26  ;;  %v522_v58 = vpop.xlane.xlu1 %521 }
 0x195   : > { %v1483_v53 = vsub.f32 %v1327_v42, %v522_v58  ;;  %v519_v35 = vpop.xlane.xlu0 %518  ;;  %698 = vadd.xlane.f32.xlu0 %v697_v62  ;;  %v652_v57 = vsel %vm456_vm1, %v1040_v44, 0.0  ;;  %v1042_v1 = vpop.eup %1041 }
 0x196   : > { %1051 = vpow2.f32 %v593_v47  ;;  %v1487_v36 = vsub.f32 %v1332_v46, %v519_v35  ;;  %653 = vadd.xlane.f32.xlu1 %v652_v57  ;;  %v700_v14 = vsel %vm456_vm1, %v1042_v1, 0.0 }
 0x197   : > { %1053 = vpow2.f32 %v595_v55  ;;  %v627_v3 = vmul.f32 1.442695, %v1483_v53 }
 0x198   : > { %v1044_v61 = vpop.eup %1043  ;;  %v625_v63 = vmul.f32 1.442695, %v1487_v36  ;;  %v492_v5 = vpop.xlane.xlu1 %491 }
 0x199   : > { %v1046_v7 = vpop.eup %1045  ;;  %v1492_v42 = vsub.f32 %v1337_v49, %v492_v5  ;;  %v489_v12 = vpop.xlane.xlu0 %488  ;;  %v667_v13 = vsel %vm456_vm1, %v1044_v61, 0.0 }
 0x19a   : > { %1055 = vpow2.f32 %v625_v63  ;;  %v1497_v46 = vsub.f32 %v1340_v51, %v489_v12  ;;  %701 = vadd.xlane.f32.xlu1 %v700_v14  ;;  %668 = vadd.xlane.f32.xlu0 %v667_v13  ;;  %v670_v30 = vsel %vm456_vm1, %v1046_v7, 0.0 }
 0x19b   : > { %1057 = vpow2.f32 %v627_v3  ;;  %v607_v23 = vmul.f32 1.442695, %v1492_v42 }
 0x19c   : > { %v1048_v15 = vpop.eup %1047  ;;  %v605_v24 = vmul.f32 1.442695, %v1497_v46  ;;  %v540_v25 = vpop.xlane.xlu1 %539 }
 0x19d   : > { %v1502_v49 = vsub.f32 %v1347_v56, %v540_v25  ;;  %v537_v27 = vpop.xlane.xlu0 %536  ;;  %v715_v31 = vsel %vm456_vm1, %v1048_v15, 0.0  ;;  %v1050_v32 = vpop.eup %1049 }
 0x19e   : > { %1059 = vpow2.f32 %v605_v24  ;;  %v1507_v51 = vsub.f32 %v1352_v59, %v537_v27  ;;  %671 = vadd.xlane.f32.xlu1 %v670_v30  ;;  %716 = vadd.xlane.f32.xlu0 %v715_v31  ;;  %v718_v52 = vsel %vm456_vm1, %v1050_v32, 0.0 }
 0x19f   : > { %1061 = vpow2.f32 %v607_v23  ;;  %v639_v50 = vmul.f32 1.442695, %v1502_v49 }
 0x1a0   : > { %v1052_v33 = vpop.eup %1051  ;;  %v637_v38 = vmul.f32 1.442695, %v1507_v51  ;;  %v486_v56 = vpop.xlane.xlu1 %485 }
 0x1a1   : > { %v1512_v39 = vsub.f32 %v1361_v0, %v486_v56  ;;  %v483_v22 = vpop.xlane.xlu0 %482  ;;  %v661_v44 = vsel %vm456_vm1, %v1052_v33, 0.0  ;;  %v1054_v55 = vpop.eup %1053 }
 0x1a2   : > { %1063 = vpow2.f32 %v637_v38  ;;  %v1517_v59 = vsub.f32 %v1364_v2, %v483_v22  ;;  %719 = vadd.xlane.f32.xlu1 %v718_v52  ;;  %662 = vadd.xlane.f32.xlu0 %v661_v44  ;;  %v664_v1 = vsel %vm456_vm1, %v1054_v55, 0.0 }
 0x1a3   : > { %1065 = vpow2.f32 %v639_v50  ;;  %v603_v58 = vmul.f32 1.442695, %v1512_v39 }
 0x1a4   : > { %v1056_v47 = vpop.eup %1055  ;;  %v601_v62 = vmul.f32 1.442695, %v1517_v59  ;;  %v534_v0 = vpop.xlane.xlu1 %533 }
 0x1a5   : > { %v1522_v35 = vsub.f32 %v1367_v4, %v534_v0  ;;  %v531_v57 = vpop.xlane.xlu0 %530  ;;  %v709_v61 = vsel %vm456_vm1, %v1056_v47, 0.0  ;;  %v1058_v3 = vpop.eup %1057 }
 0x1a6   : > { %1067 = vpow2.f32 %v601_v62  ;;  %v1527_v2 = vsub.f32 %v1372_v6, %v531_v57  ;;  %665 = vadd.xlane.f32.xlu1 %v664_v1  ;;  %710 = vadd.xlane.f32.xlu0 %v709_v61  ;;  %v712_v13 = vsel %vm456_vm1, %v1058_v3, 0.0 }
 0x1a7   : > { %1069 = vpow2.f32 %v603_v58  ;;  %v635_v5 = vmul.f32 1.442695, %v1522_v35 }
 0x1a8   : > { %v1060_v63 = vpop.eup %1059  ;;  %v633_v7 = vmul.f32 1.442695, %v1527_v2  ;;  %v504_v4 = vpop.xlane.xlu1 %503 }
 0x1a9   : > { %v1532_v12 = vsub.f32 %v1377_v8, %v504_v4  ;;  %v501_v14 = vpop.xlane.xlu0 %500  ;;  %v679_v15 = vsel %vm456_vm1, %v1060_v63, 0.0  ;;  %v1062_v23 = vpop.eup %1061 }
 0x1aa   : > { %1071 = vpow2.f32 %v633_v7  ;;  %v1537_v6 = vsub.f32 %v1380_v9, %v501_v14  ;;  %713 = vadd.xlane.f32.xlu1 %v712_v13  ;;  %680 = vadd.xlane.f32.xlu0 %v679_v15  ;;  %v682_v32 = vsel %vm456_vm1, %v1062_v23, 0.0 }
 0x1ab   : > { %1073 = vpow2.f32 %v635_v5  ;;  %v615_v25 = vmul.f32 1.442695, %v1532_v12 }
 0x1ac   : > { %v1064_v24 = vpop.eup %1063  ;;  %v613_v27 = vmul.f32 1.442695, %v1537_v6  ;;  %v498_v8 = vpop.xlane.xlu1 %497 }
 0x1ad   : > { %v1542_v30 = vsub.f32 %v1391_v16, %v498_v8  ;;  %v495_v31 = vpop.xlane.xlu0 %494  ;;  %v727_v33 = vsel %vm456_vm1, %v1064_v24, 0.0  ;;  %v1066_v50 = vpop.eup %1065 }
 0x1ae   : > { %1075 = vpow2.f32 %v613_v27  ;;  %v1547_v9 = vsub.f32 %v1394_v19, %v495_v31  ;;  %683 = vadd.xlane.f32.xlu1 %v682_v32  ;;  %728 = vadd.xlane.f32.xlu0 %v727_v33  ;;  %v730_v55 = vsel %vm456_vm1, %v1066_v50, 0.0 }
 0x1af   : > { %1077 = vpow2.f32 %v615_v25  ;;  %v611_v56 = vmul.f32 1.442695, %v1542_v30 }
 0x1b0   : > { %v1068_v38 = vpop.eup %1067  ;;  %v609_v22 = vmul.f32 1.442695, %v1547_v9  ;;  %v546_v16 = vpop.xlane.xlu1 %545 }
 0x1b1   : > { %v1552_v52 = vsub.f32 %v1397_v20, %v546_v16  ;;  %v543_v44 = vpop.xlane.xlu0 %542  ;;  %v673_v47 = vsel %vm456_vm1, %v1068_v38, 0.0  ;;  %v1070_v58 = vpop.eup %1069 }
 0x1b2   : > { %1079 = vpow2.f32 %v609_v22  ;;  %v1557_v19 = vsub.f32 %v1400_v21, %v543_v44  ;;  %731 = vadd.xlane.f32.xlu1 %v730_v55  ;;  %674 = vadd.xlane.f32.xlu0 %v673_v47  ;;  %v676_v3 = vsel %vm456_vm1, %v1070_v58, 0.0 }
 0x1b3   : > { %1081 = vpow2.f32 %v611_v56  ;;  %v643_v0 = vmul.f32 1.442695, %v1552_v52 }
 0x1b4   : > { %v1072_v62 = vpop.eup %1071  ;;  %v641_v57 = vmul.f32 1.442695, %v1557_v19  ;;  %v552_v20 = vpop.xlane.xlu1 %551 }
 0x1b5   : > { %v1562_v1 = vsub.f32 %v1411_v28, %v552_v20  ;;  %v549_v61 = vpop.xlane.xlu0 %548  ;;  %v721_v63 = vsel %vm456_vm1, %v1072_v62, 0.0  ;;  %v1074_v5 = vpop.eup %1073 }
 0x1b6   : > { %1083 = vpow2.f32 %v641_v57  ;;  %v1567_v21 = vsub.f32 %v1414_v29, %v549_v61  ;;  %677 = vadd.xlane.f32.xlu1 %v676_v3  ;;  %722 = vadd.xlane.f32.xlu0 %v721_v63  ;;  %v724_v28 = vsel %vm456_vm1, %v1074_v5, 0.0 }
 0x1b7   : > { %1085 = vpow2.f32 %v643_v0  ;;  %v647_v4 = vmul.f32 1.442695, %v1562_v1 }
 0x1b8   : > { %v1076_v7 = vpop.eup %1075  ;;  %v645_v14 = vmul.f32 1.442695, %v1567_v21 }
 0x1b9   : > { %v691_v13 = vsel %vm456_vm1, %v1076_v7, 0.0  ;;  %v1078_v15 = vpop.eup %1077 }
 0x1ba   : > { %1087 = vpow2.f32 %v645_v14  ;;  %725 = vadd.xlane.f32.xlu1 %v724_v28  ;;  %692 = vadd.xlane.f32.xlu0 %v691_v13  ;;  %v694_v29 = vsel %vm456_vm1, %v1078_v15, 0.0 }
 0x1bb   : > { %1089 = vpow2.f32 %v647_v4 }
 0x1bc   : > { %v1080_v23 = vpop.eup %1079 }
 0x1bd   : > { %v685_v24 = vsel %vm456_vm1, %v1080_v23, 0.0  ;;  %v1082_v25 = vpop.eup %1081 }
 0x1be   : > { %695 = vadd.xlane.f32.xlu1 %v694_v29  ;;  %686 = vadd.xlane.f32.xlu0 %v685_v24  ;;  %v688_v8 = vsel %vm456_vm1, %v1082_v25, 0.0 }
 0x1c0   : > { %v1084_v27 = vpop.eup %1083 }
 0x1c1   : > { %v733_v31 = vsel %vm456_vm1, %v1084_v27, 0.0  ;;  %v1086_v32 = vpop.eup %1085 }
 0x1c2   : > { %689 = vadd.xlane.f32.xlu1 %v688_v8  ;;  %734 = vadd.xlane.f32.xlu0 %v733_v31  ;;  %v736_v50 = vsel %vm456_vm1, %v1086_v32, 0.0 }
 0x1c4   : > { %v1088_v33 = vpop.eup %1087 }
 0x1c5   : > { %v739_v38 = vsel %vm456_vm1, %v1088_v33, 0.0  ;;  %v1090_v56 = vpop.eup %1089 }
 0x1c6   : > { %737 = vadd.xlane.f32.xlu1 %v736_v50  ;;  %740 = vadd.xlane.f32.xlu0 %v739_v38  ;;  %v742_v22 = vsel %vm456_vm1, %v1090_v56, 0.0 }
 0x1ca   : > { %743 = vadd.xlane.f32.xlu1 %v742_v22 }
 0x216   : > { %v657_v16 = vpop.xlane.xlu0 %656 }
 0x217   : > { %1091 = vlog2.f32 %v657_v16 }
 0x21a   : > { %v660_v44 = vpop.xlane.xlu1 %659  ;;  %v705_v55 = vpop.xlane.xlu0 %704 }
 0x21b   : > { %1093 = vlog2.f32 %v660_v44 }
 0x21c   : > { %1095 = vlog2.f32 %v705_v55 }
 0x21e   : > { %v708_v47 = vpop.xlane.xlu1 %707  ;;  %v651_v58 = vpop.xlane.xlu0 %650 }
 0x21f   : > { %1097 = vlog2.f32 %v708_v47 }
 0x220   : > { %1099 = vlog2.f32 %v651_v58 }
 0x221   : > { %v1092_v62 = vpop.eup %1091 }
 0x222   : > { %v750_v0 = vmul.f32 0.6931472, %v1092_v62  ;;  %v699_v57 = vpop.xlane.xlu0 %698 }
 0x223   : > { %v654_v20 = vpop.xlane.xlu1 %653  ;;  %1101 = vlog2.f32 %v699_v57 }
 0x224   : > { %v811_v61 = vsub.f32 %v1421_v34, %v750_v0  ;;  %1103 = vlog2.f32 %v654_v20 }
 0x225   : > { %v1094_v3 = vpop.eup %1093 }
 0x226   : > { %v1096_v63 = vpop.eup %1095  ;;  %843 = vst.msk [vmem:[%s1585_s27 + $0x10] sm:$0xff] %vm456_vm1, %v811_v61  ;;  %v752_v5 = vmul.f32 0.6931472, %v1094_v3 }
 0x227   : > { %v782_v7 = vmul.f32 0.6931472, %v1096_v63  ;;  %v702_v4 = vpop.xlane.xlu1 %701  ;;  %v669_v14 = vpop.xlane.xlu0 %668 }
 0x228   : > { %v812_v28 = vsub.f32 %v1429_v40, %v752_v5  ;;  %1105 = vlog2.f32 %v702_v4 }
 0x229   : > { %v1098_v13 = vpop.eup %1097  ;;  %v827_v15 = vsub.f32 %v1424_v37, %v782_v7  ;;  %1107 = vlog2.f32 %v669_v14 }
 0x22a   : > { %v1100_v34 = vpop.eup %1099  ;;  %844 = vst.msk [vmem:[%s1585_s27 + $0x18] sm:$0xff] %vm456_vm1, %v812_v28  ;;  %v784_v23 = vmul.f32 0.6931472, %v1098_v13 }
 0x22b   : > { %859 = vst.msk [vmem:[%s1585_s27 + $0x90] sm:$0xff] %vm456_vm1, %v827_v15  ;;  %v746_v29 = vmul.f32 0.6931472, %v1100_v34  ;;  %v672_v24 = vpop.xlane.xlu1 %671  ;;  %v717_v25 = vpop.xlane.xlu0 %716 }
 0x22c   : > { %v828_v27 = vsub.f32 %v1437_v45, %v784_v23  ;;  %1109 = vlog2.f32 %v672_v24 }
 0x22d   : > { %v1102_v40 = vpop.eup %1101  ;;  %v809_v8 = vsub.f32 %v1432_v43, %v746_v29  ;;  %1111 = vlog2.f32 %v717_v25 }
 0x22e   : > { %v1104_v37 = vpop.eup %1103  ;;  %860 = vst.msk [vmem:[%s1585_s27 + $0x98] sm:$0xff] %vm456_vm1, %v828_v27  ;;  %v778_v31 = vmul.f32 0.6931472, %v1102_v40 }
 0x22f   : > { %841 = vst.msk [vmem:[%s1585_s27] sm:$0xff] %vm456_vm1, %v809_v8  ;;  %v748_v32 = vmul.f32 0.6931472, %v1104_v37  ;;  %v720_v33 = vpop.xlane.xlu1 %719  ;;  %v663_v50 = vpop.xlane.xlu0 %662 }
 0x230   : > { %v825_v38 = vsub.f32 %v1440_v48, %v778_v31  ;;  %1113 = vlog2.f32 %v720_v33 }
 0x231   : > { %v810_v45 = vsub.f32 %v1448_v60, %v748_v32  ;;  %1115 = vlog2.f32 %v663_v50 }
 0x232   : > { %v1106_v56 = vpop.eup %1105  ;;  %857 = vst.msk [vmem:[%s1585_s27 + $0x80] sm:$0xff] %vm456_vm1, %v825_v38 }
 0x233   : > { %v1108_v43 = vpop.eup %1107  ;;  %842 = vst.msk [vmem:[%s1585_s27 + $0x8] sm:$0xff] %vm456_vm1, %v810_v45  ;;  %v780_v22 = vmul.f32 0.6931472, %v1106_v56  ;;  %v666_v16 = vpop.xlane.xlu1 %665 }
 0x234   : > { %v711_v44 = vpop.xlane.xlu0 %710  ;;  %v758_v55 = vmul.f32 0.6931472, %v1108_v43  ;;  %1117 = vlog2.f32 %v666_v16 }
 0x235   : > { %v826_v47 = vsub.f32 %v1445_v54, %v780_v22  ;;  %1119 = vlog2.f32 %v711_v44 }
 0x236   : > { %v1110_v48 = vpop.eup %1109  ;;  %v815_v60 = vsub.f32 %v1457_v10, %v758_v55 }
 0x237   : > { %v1112_v58 = vpop.eup %1111  ;;  %858 = vst.msk [vmem:[%s1585_s27 + $0x88] sm:$0xff] %vm456_vm1, %v826_v47  ;;  %v760_v62 = vmul.f32 0.6931472, %v1110_v48  ;;  %v714_v0 = vpop.xlane.xlu1 %713 }
 0x238   : > { %v681_v57 = vpop.xlane.xlu0 %680  ;;  %847 = vst.msk [vmem:[%s1585_s27 + $0x30] sm:$0xff] %vm456_vm1, %v815_v60  ;;  %v790_v20 = vmul.f32 0.6931472, %v1112_v58  ;;  %1121 = vlog2.f32 %v714_v0 }
 0x239   : > { %v816_v61 = vsub.f32 %v1454_v11, %v760_v62  ;;  %1123 = vlog2.f32 %v681_v57 }
 0x23a   : > { %v1114_v54 = vpop.eup %1113  ;;  %v831_v3 = vsub.f32 %v1467_v18, %v790_v20 }
 0x23b   : > { %v1116_v63 = vpop.eup %1115  ;;  %848 = vst.msk [vmem:[%s1585_s27 + $0x38] sm:$0xff] %vm456_vm1, %v816_v61  ;;  %v792_v10 = vmul.f32 0.6931472, %v1114_v54  ;;  %v684_v5 = vpop.xlane.xlu1 %683 }
 0x23c   : > { %v729_v7 = vpop.xlane.xlu0 %728  ;;  %863 = vst.msk [vmem:[%s1585_s27 + $0xb0] sm:$0xff] %vm456_vm1, %v831_v3  ;;  %v754_v4 = vmul.f32 0.6931472, %v1116_v63  ;;  %1125 = vlog2.f32 %v684_v5 }
 0x23d   : > { %v832_v14 = vsub.f32 %v1464_v17, %v792_v10  ;;  %1127 = vlog2.f32 %v729_v7 }
 0x23e   : > { %v1118_v11 = vpop.eup %1117  ;;  %v813_v28 = vsub.f32 %v1477_v26, %v754_v4 }
 0x23f   : > { %v1120_v13 = vpop.eup %1119  ;;  %864 = vst.msk [vmem:[%s1585_s27 + $0xb8] sm:$0xff] %vm456_vm1, %v832_v14  ;;  %v756_v18 = vmul.f32 0.6931472, %v1118_v11  ;;  %v732_v15 = vpop.xlane.xlu1 %731 }
 0x240   : > { %v675_v34 = vpop.xlane.xlu0 %674  ;;  %845 = vst.msk [vmem:[%s1585_s27 + $0x20] sm:$0xff] %vm456_vm1, %v813_v28  ;;  %v786_v23 = vmul.f32 0.6931472, %v1120_v13  ;;  %1129 = vlog2.f32 %v732_v15 }
 0x241   : > { %v814_v29 = vsub.f32 %v1474_v41, %v756_v18  ;;  %1131 = vlog2.f32 %v675_v34 }
 0x242   : > { %v1122_v17 = vpop.eup %1121  ;;  %v829_v24 = vsub.f32 %v1487_v36, %v786_v23 }
 0x243   : > { %v1124_v25 = vpop.eup %1123  ;;  %846 = vst.msk [vmem:[%s1585_s27 + $0x28] sm:$0xff] %vm456_vm1, %v814_v29  ;;  %v788_v26 = vmul.f32 0.6931472, %v1122_v17  ;;  %v678_v27 = vpop.xlane.xlu1 %677 }
 0x244   : > { %v723_v40 = vpop.xlane.xlu0 %722  ;;  %861 = vst.msk [vmem:[%s1585_s27 + $0xa0] sm:$0xff] %vm456_vm1, %v829_v24  ;;  %v766_v8 = vmul.f32 0.6931472, %v1124_v25  ;;  %1133 = vlog2.f32 %v678_v27 }
 0x245   : > { %v830_v37 = vsub.f32 %v1483_v53, %v788_v26  ;;  %1135 = vlog2.f32 %v723_v40 }
 0x246   : > { %v1126_v41 = vpop.eup %1125  ;;  %v819_v31 = vsub.f32 %v1497_v46, %v766_v8 }
 0x247   : > { %v1128_v32 = vpop.eup %1127  ;;  %862 = vst.msk [vmem:[%s1585_s27 + $0xa8] sm:$0xff] %vm456_vm1, %v830_v37  ;;  %v768_v36 = vmul.f32 0.6931472, %v1126_v41  ;;  %v726_v33 = vpop.xlane.xlu1 %725 }
 0x248   : > { %v693_v50 = vpop.xlane.xlu0 %692  ;;  %851 = vst.msk [vmem:[%s1585_s27 + $0x50] sm:$0xff] %vm456_vm1, %v819_v31  ;;  %v798_v38 = vmul.f32 0.6931472, %v1128_v32  ;;  %1137 = vlog2.f32 %v726_v33 }
 0x249   : > { %v820_v45 = vsub.f32 %v1492_v42, %v768_v36  ;;  %1139 = vlog2.f32 %v693_v50 }
 0x24a   : > { %v1130_v53 = vpop.eup %1129  ;;  %v835_v56 = vsub.f32 %v1507_v51, %v798_v38 }
 0x24b   : > { %v1132_v43 = vpop.eup %1131  ;;  %852 = vst.msk [vmem:[%s1585_s27 + $0x58] sm:$0xff] %vm456_vm1, %v820_v45  ;;  %v800_v46 = vmul.f32 0.6931472, %v1130_v53  ;;  %v696_v22 = vpop.xlane.xlu1 %695 }
 0x24c   : > { %v687_v16 = vpop.xlane.xlu0 %686  ;;  %867 = vst.msk [vmem:[%s1585_s27 + $0xd0] sm:$0xff] %vm456_vm1, %v835_v56  ;;  %v762_v44 = vmul.f32 0.6931472, %v1132_v43  ;;  %1141 = vlog2.f32 %v696_v22 }
 0x24d   : > { %v836_v55 = vsub.f32 %v1502_v49, %v800_v46  ;;  %1143 = vlog2.f32 %v687_v16 }
 0x24e   : > { %v1134_v42 = vpop.eup %1133  ;;  %v817_v47 = vsub.f32 %v1517_v59, %v762_v44 }
 0x24f   : > { %v1136_v48 = vpop.eup %1135  ;;  %868 = vst.msk [vmem:[%s1585_s27 + $0xd8] sm:$0xff] %vm456_vm1, %v836_v55  ;;  %v764_v51 = vmul.f32 0.6931472, %v1134_v42  ;;  %v690_v60 = vpop.xlane.xlu1 %689 }
 0x250   : > { %v735_v58 = vpop.xlane.xlu0 %734  ;;  %849 = vst.msk [vmem:[%s1585_s27 + $0x40] sm:$0xff] %vm456_vm1, %v817_v47  ;;  %v794_v62 = vmul.f32 0.6931472, %v1136_v48  ;;  %1145 = vlog2.f32 %v690_v60 }
 0x251   : > { %v818_v0 = vsub.f32 %v1512_v39, %v764_v51  ;;  %1147 = vlog2.f32 %v735_v58 }
 0x252   : > { %v1138_v49 = vpop.eup %1137  ;;  %v833_v57 = vsub.f32 %v1527_v2, %v794_v62 }
 0x253   : > { %v1140_v20 = vpop.eup %1139  ;;  %850 = vst.msk [vmem:[%s1585_s27 + $0x48] sm:$0xff] %vm456_vm1, %v818_v0  ;;  %v796_v59 = vmul.f32 0.6931472, %v1138_v49  ;;  %v738_v61 = vpop.xlane.xlu1 %737 }
 0x254   : > { %v741_v54 = vpop.xlane.xlu0 %740  ;;  %865 = vst.msk [vmem:[%s1585_s27 + $0xc0] sm:$0xff] %vm456_vm1, %v833_v57  ;;  %v774_v3 = vmul.f32 0.6931472, %v1140_v20  ;;  %1149 = vlog2.f32 %v738_v61 }
 0x255   : > { %v834_v63 = vsub.f32 %v1522_v35, %v796_v59  ;;  %1151 = vlog2.f32 %v741_v54 }
 0x256   : > { %v1142_v39 = vpop.eup %1141  ;;  %v823_v10 = vsub.f32 %v1537_v6, %v774_v3 }
 0x257   : > { %v1144_v2 = vpop.eup %1143  ;;  %866 = vst.msk [vmem:[%s1585_s27 + $0xc8] sm:$0xff] %vm456_vm1, %v834_v63  ;;  %v776_v5 = vmul.f32 0.6931472, %v1142_v39  ;;  %v744_v7 = vpop.xlane.xlu1 %743 }
 0x258   : > { %855 = vst.msk [vmem:[%s1585_s27 + $0x70] sm:$0xff] %vm456_vm1, %v823_v10  ;;  %v770_v4 = vmul.f32 0.6931472, %v1144_v2  ;;  %1153 = vlog2.f32 %v744_v7 }
 0x259   : > { %v824_v14 = vsub.f32 %v1532_v12, %v776_v5 }
 0x25a   : > { %v1146_v11 = vpop.eup %1145  ;;  %v821_v35 = vsub.f32 %v1547_v9, %v770_v4 }
 0x25b   : > { %v1148_v28 = vpop.eup %1147  ;;  %856 = vst.msk [vmem:[%s1585_s27 + $0x78] sm:$0xff] %vm456_vm1, %v824_v14  ;;  %v772_v6 = vmul.f32 0.6931472, %v1146_v11 }
 0x25c   : > { %853 = vst.msk [vmem:[%s1585_s27 + $0x60] sm:$0xff] %vm456_vm1, %v821_v35  ;;  %v802_v13 = vmul.f32 0.6931472, %v1148_v28 }
 0x25d   : > { %v822_v18 = vsub.f32 %v1542_v30, %v772_v6 }
 0x25e   : > { %v1150_v15 = vpop.eup %1149  ;;  %v837_v34 = vsub.f32 %v1557_v19, %v802_v13 }
 0x25f   : > { %v1152_v23 = vpop.eup %1151  ;;  %854 = vst.msk [vmem:[%s1585_s27 + $0x68] sm:$0xff] %vm456_vm1, %v822_v18  ;;  %v804_v12 = vmul.f32 0.6931472, %v1150_v15 }
 0x260   : > { %869 = vst.msk [vmem:[%s1585_s27 + $0xe0] sm:$0xff] %vm456_vm1, %v837_v34  ;;  %v806_v9 = vmul.f32 0.6931472, %v1152_v23 }
 0x261   : > { %v838_v29 = vsub.f32 %v1552_v52, %v804_v12 }
 0x262   : > { %v1154_v17 = vpop.eup %1153  ;;  %v839_v24 = vsub.f32 %v1567_v21, %v806_v9 }
 0x263   : > { %870 = vst.msk [vmem:[%s1585_s27 + $0xe8] sm:$0xff] %vm456_vm1, %v838_v29  ;;  %v808_v25 = vmul.f32 0.6931472, %v1154_v17 }
 0x264   : > { %871 = vst.msk [vmem:[%s1585_s27 + $0xf0] sm:$0xff] %vm456_vm1, %v839_v24 }
 0x265   : > { %v840_v30 = vsub.f32 %v1562_v1, %v808_v25 }
 0x267   : > { %872 = vst.msk [vmem:[%s1585_s27 + $0xf8] sm:$0xff] %vm456_vm1, %v840_v30 }
 0x268 PF: > { %s13_s12 = sadd.s32 1, %s1161_s12  }
 0x269   : > { %p10_p4 = scmp.ge.s32.totalorder %s13_s12, 4  }
 0x26b   :  { %12 = sbr.rel (!%p10_p4) target bundleno = 1 (0x1), region = 62 }

</bundles_post_ra>
